<compile_context>
chip_gen: v5e
topology: v5e:2x2
jax: 0.10.0
libtpu: 0.0.40
codegen_flags: <defaults>
</compile_context>

<pallas_src>
import math
import functools

import jax
import jax.numpy as jnp
from jax.experimental import pallas as pl
from jax.experimental.pallas import tpu as pltpu


def _decoder_kernel(x_ref, wfc_ref, gamma_ref, beta_ref, wrec_ref, out_ref,
                    *, n_steps, chunk_size, valid_rows, eps):
    """One batch tile of TILE rows (whole virtual-batch chunks + optional pad).

    x_ref:     [S, TILE, P]  stacked step outputs (batch rows on sublanes)
    wfc_ref:   [S, 2P, P]    GLU fc weights (torch layout, a/b halves fused)
    gamma_ref: [S, 2P, 1]    BN scale (per feature -> per sublane)
    beta_ref:  [S, 2P, 1]    BN shift
    wrec_ref:  [P, D]        reconstruction weight (pre-transposed)
    out_ref:   [TILE, D]
    """
    _, TILE, P = x_ref.shape
    nc = TILE // chunk_size          # whole chunk slots per tile (tile is chunk-aligned)

    # Chunk-membership matrix seg[c, l] = 1 iff row l of this tile belongs to
    # virtual-batch chunk c AND is a real (non-padded) batch row.  Built once
    # per tile; all BN reductions become matmuls against it (no reshapes).
    lane = jax.lax.broadcasted_iota(jnp.int32, (nc, TILE), 1)
    cid = jax.lax.broadcasted_iota(jnp.int32, (nc, TILE), 0)
    lo = cid * chunk_size
    in_chunk = jnp.logical_and(lane >= lo, lane < lo + chunk_size)
    row = pl.program_id(0) * TILE + lane
    seg = jnp.where(jnp.logical_and(in_chunk, row < valid_rows), 1.0, 0.0)

    ones_row = jnp.ones((1, TILE), jnp.float32)
    counts = jax.lax.dot_general(ones_row, seg, (((1,), (1,)), ((), ())),
                                 preferred_element_type=jnp.float32)      # [1, nc]
    inv_cnt = jnp.where(counts > 0.5, 1.0 / counts, 0.0)                  # [1, nc]

    res = jnp.zeros((P, TILE), jnp.float32)
    for s in range(n_steps):                      # static; n_steps is tiny
        x = x_ref[s].astype(jnp.float32)          # [TILE, P]  (upcast in-kernel)
        w = wfc_ref[s]                            # [2P, P]
        # h^T = W_fc @ x^T  -> [2P, TILE]  (batch on lanes, full-lane VPU work)
        h = jax.lax.dot_general(w, x, (((1,), (1,)), ((), ())),
                                preferred_element_type=jnp.float32)
        # GhostBatchNorm: two-pass per-chunk mean/var via MXU segment sums.
        sums = jax.lax.dot_general(h, seg, (((1,), (1,)), ((), ())),
                                   preferred_element_type=jnp.float32)    # [2P, nc]
        mean = sums * inv_cnt
        mean_b = jax.lax.dot_general(mean, seg, (((1,), (0,)), ((), ())),
                                     preferred_element_type=jnp.float32)  # [2P, TILE]
        d = h - mean_b
        var = jax.lax.dot_general(d * d, seg, (((1,), (1,)), ((), ())),
                                  preferred_element_type=jnp.float32) * inv_cnt
        rstd = jax.lax.rsqrt(var + eps)                                   # [2P, nc]
        rstd_b = jax.lax.dot_general(rstd, seg, (((1,), (0,)), ((), ())),
                                     preferred_element_type=jnp.float32)  # [2P, TILE]
        hn = d * rstd_b * gamma_ref[s] + beta_ref[s]                      # [2P, TILE]
        a = hn[:P]                                  # sublane-aligned a/b split
        b = hn[P:]
        res = res + a * jax.nn.sigmoid(b)

    # out = res^T @ W_rec^T : [TILE, D], stored D-wide (no lane zero-padding).
    out_ref[...] = jax.lax.dot_general(
        res, wrec_ref[...], (((0,), (0,)), ((), ())),
        preferred_element_type=jnp.float32).astype(out_ref.dtype)


def _choose_tile(batch, chunk_size, row_budget):
    """Whole-chunk-aligned, sublane-aligned tile; prefer >=2 grid tiles."""
    unit = (8 * chunk_size) // math.gcd(8, chunk_size)   # lcm(8, chunk_size)
    units_total = -(-batch // unit)
    budget_units = max(1, row_budget // unit)
    if units_total >= 2:
        units_per_tile = max(1, min(budget_units, -(-units_total // 2)))
    else:
        units_per_tile = 1
    tile = unit * units_per_tile
    num_tiles = -(-batch // tile)
    return tile, num_tiles


def decoder_forward(steps_output, wfc_t, gamma, beta, wrec_t,
                    *, virtual_batch_size=128, eps=1e-5, row_budget=2048):
    """steps_output: list of [B, P] arrays OR a pre-stacked [S, B, P] array.

    wfc_t:  [S, P, 2P]  per-step GLU fc weight, pre-transposed (x @ W)
    gamma:  [S, 1, 2P]  BN scale   beta: [S, 1, 2P]  BN shift
    wrec_t: [P, D]      reconstruction weight, pre-transposed (res @ W)
    """
    if isinstance(steps_output, (list, tuple)):
        x_stack = jnp.stack(steps_output, axis=0)
    else:
        x_stack = steps_output
    if x_stack.dtype not in (jnp.float32, jnp.bfloat16):
        x_stack = x_stack.astype(jnp.float32)
    S, B, P = x_stack.shape
    D = wrec_t.shape[1]

    # Kernel-side parameter layouts (feature axis on sublanes); tiny one-time ops.
    wfc = jnp.transpose(wfc_t.astype(jnp.float32), (0, 2, 1))   # [S, 2P, P]
    gam = jnp.transpose(gamma.astype(jnp.float32), (0, 2, 1))   # [S, 2P, 1]
    bet = jnp.transpose(beta.astype(jnp.float32), (0, 2, 1))    # [S, 2P, 1]
    wrec = wrec_t.astype(jnp.float32)                           # [P, D]

    # torch.chunk(ceil(B/vbs)) semantics: chunks of ceil(B/n_chunks) rows,
    # last chunk possibly smaller (handled in-kernel via the validity mask).
    n_chunks = int(math.ceil(B / virtual_batch_size))
    chunk_size = int(math.ceil(B / n_chunks))

    tile, num_tiles = _choose_tile(B, chunk_size, row_budget)
    b_pad = num_tiles * tile
    if b_pad != B:
        x_stack = jnp.concatenate(
            [x_stack, jnp.zeros((S, b_pad - B, P), x_stack.dtype)], axis=1)

    kernel = functools.partial(
        _decoder_kernel, n_steps=S, chunk_size=chunk_size, valid_rows=B, eps=eps)

    out = pl.pallas_call(
        kernel,
        out_shape=jax.ShapeDtypeStruct((b_pad, D), jnp.float32),
        grid=(num_tiles,),
        in_specs=[
            pl.BlockSpec((S, tile, P), lambda i: (0, i, 0)),     # x tile (batch-gridded)
            pl.BlockSpec((S, 2 * P, P), lambda i: (0, 0, 0)),    # fused GLU fc weights
            pl.BlockSpec((S, 2 * P, 1), lambda i: (0, 0, 0)),    # gamma
            pl.BlockSpec((S, 2 * P, 1), lambda i: (0, 0, 0)),    # beta
            pl.BlockSpec((P, D), lambda i: (0, 0)),              # wrec (unpadded, D-wide)
        ],
        out_specs=pl.BlockSpec((tile, D), lambda i: (i, 0)),
        compiler_params=pltpu.CompilerParams(
            dimension_semantics=("parallel",)),                  # shard tiles across TCs
    )(x_stack, wfc, gam, bet, wrec)
    return out if b_pad == B else out[:B]


def decoder_reference(steps_output, wfc_t, gamma, beta, wrec_t,
                      *, virtual_batch_size=128, eps=1e-5):
    """Pure-JAX reference with exact torch.chunk semantics."""
    if isinstance(steps_output, (list, tuple)):
        x_stack = jnp.stack(steps_output, axis=0)
    else:
        x_stack = steps_output
    x_stack = x_stack.astype(jnp.float32)
    S, B, P = x_stack.shape

    n_chunks = int(math.ceil(B / virtual_batch_size))
    chunk_size = int(math.ceil(B / n_chunks))
    bounds = []
    start = 0
    while start < B:
        size = min(chunk_size, B - start)
        bounds.append((start, size))
        start += size

    res = jnp.zeros((B, P), jnp.float32)
    for s in range(S):
        h = x_stack[s] @ wfc_t[s].astype(jnp.float32)
        parts = []
        for (st, sz) in bounds:
            hc = h[st:st + sz]
            mean = jnp.mean(hc, axis=0, keepdims=True)
            var = jnp.mean((hc - mean) ** 2, axis=0, keepdims=True)  # biased
            parts.append((hc - mean) / jnp.sqrt(var + eps))
        hn = jnp.concatenate(parts, axis=0) * gamma[s] + beta[s]
        res = res + hn[:, :P] * jax.nn.sigmoid(hn[:, P:])
    return res @ wrec_t.astype(jnp.float32)


def _make_problem(key, S, B, P, D):
    k_steps, k_fc, k_rec, k_g, k_b = jax.random.split(key, 5)
    x_stack = jax.random.normal(k_steps, (S, B, P), dtype=jnp.float32)
    wfc_t = 0.3 * jax.random.normal(k_fc, (S, P, 2 * P), dtype=jnp.float32)
    wrec_t = 0.3 * jax.random.normal(k_rec, (P, D), dtype=jnp.float32)
    gamma = 1.0 + 0.1 * jax.random.normal(k_g, (S, 1, 2 * P), dtype=jnp.float32)
    beta = 0.1 * jax.random.normal(k_b, (S, 1, 2 * P), dtype=jnp.float32)
    return x_stack, wfc_t, gamma, beta, wrec_t


if __name__ == "__main__":
    key = jax.random.PRNGKey(0)
    k1, k2, k3, k4 = jax.random.split(key, 4)

    # Test 1: module defaults — Decoder(input_dim=16, prediction_dim=8, n_steps=3),
    # B=8 < virtual_batch_size=128 -> single chunk, single tile. Pass a list of
    # per-step arrays (API-compatible with the original call pattern).
    S, B, P, D = 3, 8, 8, 16
    xs, wfc_t, gamma, beta, wrec_t = _make_problem(k1, S, B, P, D)
    steps_list = [xs[s] for s in range(S)]
    out = jax.block_until_ready(decoder_forward(steps_list, wfc_t, gamma, beta, wrec_t))
    ref = decoder_reference(steps_list, wfc_t, gamma, beta, wrec_t)
    assert out.shape == (B, D), out.shape
    assert jnp.allclose(out, ref, atol=1e-4, rtol=1e-4), "mismatch (test 1)"

    # Test 2: multiple equal chunks + multi-tile grid (vbs=16 -> 4 chunks of 16;
    # tile chooser puts 2 chunks per tile -> 2 grid tiles). Pre-stacked input.
    S, B, P, D = 3, 64, 8, 16
    xs, wfc_t, gamma, beta, wrec_t = _make_problem(k2, S, B, P, D)
    out = jax.block_until_ready(decoder_forward(
        xs, wfc_t, gamma, beta, wrec_t, virtual_batch_size=16))
    ref = decoder_reference(xs, wfc_t, gamma, beta, wrec_t, virtual_batch_size=16)
    assert out.shape == (B, D), out.shape
    assert jnp.allclose(out, ref, atol=1e-4, rtol=1e-4), "mismatch (test 2)"

    # Test 3: ragged last torch.chunk (B=72, vbs=16 -> chunks 15,15,15,15,12),
    # handled in-kernel via the validity mask (single tile, padded to 120 rows).
    S, B, P, D = 3, 72, 8, 16
    xs, wfc_t, gamma, beta, wrec_t = _make_problem(k3, S, B, P, D)
    out = jax.block_until_ready(decoder_forward(
        xs, wfc_t, gamma, beta, wrec_t, virtual_batch_size=16))
    ref = decoder_reference(xs, wfc_t, gamma, beta, wrec_t, virtual_batch_size=16)
    assert out.shape == (B, D), out.shape
    assert jnp.allclose(out, ref, atol=1e-4, rtol=1e-4), "mismatch (test 3)"

    # Test 4: default vbs=128 with B not a multiple of 8*chunk alignment
    # (B=300 -> 3 chunks of 100; 2 grid tiles, batch padded 300 -> 400).
    S, B, P, D = 3, 300, 8, 16
    xs, wfc_t, gamma, beta, wrec_t = _make_problem(k4, S, B, P, D)
    out = jax.block_until_ready(decoder_forward(xs, wfc_t, gamma, beta, wrec_t))
    ref = decoder_reference(xs, wfc_t, gamma, beta, wrec_t)
    assert out.shape == (B, D), out.shape
    assert jnp.allclose(out, ref, atol=1e-4, rtol=1e-4), "mismatch (test 4)"

    print("KERNEL_OK")
</pallas_src>

<mosaic_0001>
module attributes {stable_mosaic.version = 11 : i64} {
  func.func @_decoder_kernel(%arg0: i32, %arg1: memref<3x8x8xf32, #tpu.memory_space<vmem>>, %arg2: memref<3x16x8xf32, #tpu.memory_space<vmem>>, %arg3: memref<3x16x1xf32, #tpu.memory_space<vmem>>, %arg4: memref<3x16x1xf32, #tpu.memory_space<vmem>>, %arg5: memref<8x16xf32, #tpu.memory_space<vmem>>, %arg6: memref<8x16xf32, #tpu.memory_space<vmem>>) attributes {dimension_semantics = [#tpu.dimension_semantics<parallel>], iteration_bounds = array<i64: 1>, scalar_prefetch = 0 : i64, scratch_operands = 0 : i64, tpu.core_type = #tpu.core_type<tc>, window_params = [{transform_indices = @transform_0, window_bounds = array<i64: 3, 8, 8>}, {pipeline_mode = #tpu.pipeline_mode<synchronous>, transform_indices = @transform_1, window_bounds = array<i64: 3, 16, 8>}, {pipeline_mode = #tpu.pipeline_mode<synchronous>, transform_indices = @transform_2, window_bounds = array<i64: 3, 16, 1>}, {pipeline_mode = #tpu.pipeline_mode<synchronous>, transform_indices = @transform_3, window_bounds = array<i64: 3, 16, 1>}, {pipeline_mode = #tpu.pipeline_mode<synchronous>, transform_indices = @transform_4, window_bounds = array<i64: 8, 16>}, {transform_indices = @transform_5, window_bounds = array<i64: 8, 16>}]} {
    %0 = tpu.iota {dimensions = array<i32: 1>} : vector<1x8xi32>
    %1 = tpu.iota {dimensions = array<i32: 0>} : vector<1x8xi32>
    %c8_i32 = arith.constant 8 : i32
    %2 = vector.broadcast %c8_i32 : i32 to vector<1x8xi32>
    %3 = arith.muli %1, %2 : vector<1x8xi32>
    %4 = arith.cmpi sge, %0, %3 : vector<1x8xi32>
    %c8_i32_0 = arith.constant 8 : i32
    %5 = vector.broadcast %c8_i32_0 : i32 to vector<1x8xi32>
    %6 = arith.addi %3, %5 : vector<1x8xi32>
    %7 = arith.cmpi slt, %0, %6 : vector<1x8xi32>
    %8 = arith.andi %4, %7 : vector<1x8xi1>
    %c8_i32_1 = arith.constant 8 : i32
    %9 = arith.muli %arg0, %c8_i32_1 : i32
    %10 = vector.broadcast %9 : i32 to vector<1x8xi32>
    %11 = arith.addi %10, %0 : vector<1x8xi32>
    %c8_i32_2 = arith.constant 8 : i32
    %12 = vector.broadcast %c8_i32_2 : i32 to vector<1x8xi32>
    %13 = arith.cmpi slt, %11, %12 : vector<1x8xi32>
    %14 = arith.andi %8, %13 : vector<1x8xi1>
    %cst = arith.constant 1.000000e+00 : f32
    %cst_3 = arith.constant 0.000000e+00 : f32
    %15 = vector.broadcast %cst : f32 to vector<1x8xf32>
    %16 = vector.broadcast %cst_3 : f32 to vector<1x8xf32>
    %17 = arith.select %14, %15, %16 : vector<1x8xi1>, vector<1x8xf32>
    %cst_4 = arith.constant 1.000000e+00 : f32
    %18 = vector.broadcast %cst_4 : f32 to vector<1x8xf32>
    %cst_5 = arith.constant dense<0.000000e+00> : vector<1x1xf32>
    %19 = tpu.matmul %18, %17, %cst_5 {dimension_numbers = #tpu.dot_dimension_numbers<[1], [1], [0], [0], [0, 0, 1, 0], [], []>} : vector<1x8xf32>, vector<1x8xf32>, vector<1x1xf32> -> vector<1x1xf32>
    %cst_6 = arith.constant 5.000000e-01 : f32
    %20 = vector.broadcast %cst_6 : f32 to vector<1x1xf32>
    %21 = arith.cmpf ogt, %19, %20 : vector<1x1xf32>
    %cst_7 = arith.constant 1.000000e+00 : f32
    %22 = vector.broadcast %cst_7 : f32 to vector<1x1xf32>
    %23 = arith.divf %22, %19 : vector<1x1xf32>
    %cst_8 = arith.constant 0.000000e+00 : f32
    %24 = vector.broadcast %cst_8 : f32 to vector<1x1xf32>
    %25 = arith.select %21, %23, %24 : vector<1x1xi1>, vector<1x1xf32>
    %cst_9 = arith.constant 0.000000e+00 : f32
    %26 = vector.broadcast %cst_9 : f32 to vector<8x8xf32>
    %c0 = arith.constant 0 : index
    %c0_10 = arith.constant 0 : index
    %c0_11 = arith.constant 0 : index
    %27 = vector.load %arg1[%c0, %c0_10, %c0_11] : memref<3x8x8xf32, #tpu.memory_space<vmem>>, vector<1x8x8xf32>
    %28 = vector.shape_cast %27 : vector<1x8x8xf32> to vector<8x8xf32>
    %c0_12 = arith.constant 0 : index
    %c0_13 = arith.constant 0 : index
    %c0_14 = arith.constant 0 : index
    %29 = vector.load %arg2[%c0_12, %c0_13, %c0_14] : memref<3x16x8xf32, #tpu.memory_space<vmem>>, vector<1x16x8xf32>
    %30 = vector.shape_cast %29 : vector<1x16x8xf32> to vector<16x8xf32>
    %cst_15 = arith.constant dense<0.000000e+00> : vector<16x8xf32>
    %31 = tpu.matmul %30, %28, %cst_15 {dimension_numbers = #tpu.dot_dimension_numbers<[1], [1], [0], [0], [0, 0, 1, 0], [], []>} : vector<16x8xf32>, vector<8x8xf32>, vector<16x8xf32> -> vector<16x8xf32>
    %cst_16 = arith.constant dense<0.000000e+00> : vector<16x1xf32>
    %32 = tpu.matmul %31, %17, %cst_16 {dimension_numbers = #tpu.dot_dimension_numbers<[1], [1], [0], [0], [0, 0, 1, 0], [], []>} : vector<16x8xf32>, vector<1x8xf32>, vector<16x1xf32> -> vector<16x1xf32>
    %33 = vector.broadcast %25 : vector<1x1xf32> to vector<16x1xf32>
    %34 = arith.mulf %32, %33 : vector<16x1xf32>
    %cst_17 = arith.constant dense<0.000000e+00> : vector<16x8xf32>
    %35 = tpu.matmul %34, %17, %cst_17 {dimension_numbers = #tpu.dot_dimension_numbers<[1], [0], [0], [1], [0, 0, 1, 1], [], []>} : vector<16x1xf32>, vector<1x8xf32>, vector<16x8xf32> -> vector<16x8xf32>
    %36 = arith.subf %31, %35 : vector<16x8xf32>
    %37 = arith.mulf %36, %36 : vector<16x8xf32>
    %cst_18 = arith.constant dense<0.000000e+00> : vector<16x1xf32>
    %38 = tpu.matmul %37, %17, %cst_18 {dimension_numbers = #tpu.dot_dimension_numbers<[1], [1], [0], [0], [0, 0, 1, 0], [], []>} : vector<16x8xf32>, vector<1x8xf32>, vector<16x1xf32> -> vector<16x1xf32>
    %39 = vector.broadcast %25 : vector<1x1xf32> to vector<16x1xf32>
    %40 = arith.mulf %38, %39 : vector<16x1xf32>
    %cst_19 = arith.constant 9.99999974E-6 : f32
    %41 = vector.broadcast %cst_19 : f32 to vector<16x1xf32>
    %42 = arith.addf %40, %41 : vector<16x1xf32>
    %43 = math.rsqrt %42 : vector<16x1xf32>
    %cst_20 = arith.constant dense<0.000000e+00> : vector<16x8xf32>
    %44 = tpu.matmul %43, %17, %cst_20 {dimension_numbers = #tpu.dot_dimension_numbers<[1], [0], [0], [1], [0, 0, 1, 1], [], []>} : vector<16x1xf32>, vector<1x8xf32>, vector<16x8xf32> -> vector<16x8xf32>
    %45 = arith.mulf %36, %44 : vector<16x8xf32>
    %c0_21 = arith.constant 0 : index
    %c0_22 = arith.constant 0 : index
    %c0_23 = arith.constant 0 : index
    %46 = vector.load %arg3[%c0_21, %c0_22, %c0_23] : memref<3x16x1xf32, #tpu.memory_space<vmem>>, vector<1x16x1xf32>
    %47 = vector.shape_cast %46 : vector<1x16x1xf32> to vector<16x1xf32>
    %48 = vector.broadcast %47 : vector<16x1xf32> to vector<16x8xf32>
    %49 = arith.mulf %45, %48 : vector<16x8xf32>
    %c0_24 = arith.constant 0 : index
    %c0_25 = arith.constant 0 : index
    %c0_26 = arith.constant 0 : index
    %50 = vector.load %arg4[%c0_24, %c0_25, %c0_26] : memref<3x16x1xf32, #tpu.memory_space<vmem>>, vector<1x16x1xf32>
    %51 = vector.shape_cast %50 : vector<1x16x1xf32> to vector<16x1xf32>
    %52 = vector.broadcast %51 : vector<16x1xf32> to vector<16x8xf32>
    %53 = arith.addf %49, %52 : vector<16x8xf32>
    %54 = vector.extract_strided_slice %53 {offsets = [0, 0], sizes = [8, 8], strides = [1, 1]} : vector<16x8xf32> to vector<8x8xf32>
    %55 = vector.extract_strided_slice %53 {offsets = [8, 0], sizes = [8, 8], strides = [1, 1]} : vector<16x8xf32> to vector<8x8xf32>
    %56 = arith.negf %55 : vector<8x8xf32>
    %57 = math.exp %56 : vector<8x8xf32>
    %cst_27 = arith.constant 1.000000e+00 : f32
    %58 = vector.broadcast %cst_27 : f32 to vector<8x8xf32>
    %59 = arith.addf %58, %57 : vector<8x8xf32>
    %60 = arith.divf %58, %59 : vector<8x8xf32>
    %61 = arith.mulf %54, %60 : vector<8x8xf32>
    %62 = arith.addf %26, %61 : vector<8x8xf32>
    %c1 = arith.constant 1 : index
    %c0_28 = arith.constant 0 : index
    %c0_29 = arith.constant 0 : index
    %63 = vector.load %arg1[%c1, %c0_28, %c0_29] : memref<3x8x8xf32, #tpu.memory_space<vmem>>, vector<1x8x8xf32>
    %64 = vector.shape_cast %63 : vector<1x8x8xf32> to vector<8x8xf32>
    %c1_30 = arith.constant 1 : index
    %c0_31 = arith.constant 0 : index
    %c0_32 = arith.constant 0 : index
    %65 = vector.load %arg2[%c1_30, %c0_31, %c0_32] : memref<3x16x8xf32, #tpu.memory_space<vmem>>, vector<1x16x8xf32>
    %66 = vector.shape_cast %65 : vector<1x16x8xf32> to vector<16x8xf32>
    %cst_33 = arith.constant dense<0.000000e+00> : vector<16x8xf32>
    %67 = tpu.matmul %66, %64, %cst_33 {dimension_numbers = #tpu.dot_dimension_numbers<[1], [1], [0], [0], [0, 0, 1, 0], [], []>} : vector<16x8xf32>, vector<8x8xf32>, vector<16x8xf32> -> vector<16x8xf32>
    %cst_34 = arith.constant dense<0.000000e+00> : vector<16x1xf32>
    %68 = tpu.matmul %67, %17, %cst_34 {dimension_numbers = #tpu.dot_dimension_numbers<[1], [1], [0], [0], [0, 0, 1, 0], [], []>} : vector<16x8xf32>, vector<1x8xf32>, vector<16x1xf32> -> vector<16x1xf32>
    %69 = vector.broadcast %25 : vector<1x1xf32> to vector<16x1xf32>
    %70 = arith.mulf %68, %69 : vector<16x1xf32>
    %cst_35 = arith.constant dense<0.000000e+00> : vector<16x8xf32>
    %71 = tpu.matmul %70, %17, %cst_35 {dimension_numbers = #tpu.dot_dimension_numbers<[1], [0], [0], [1], [0, 0, 1, 1], [], []>} : vector<16x1xf32>, vector<1x8xf32>, vector<16x8xf32> -> vector<16x8xf32>
    %72 = arith.subf %67, %71 : vector<16x8xf32>
    %73 = arith.mulf %72, %72 : vector<16x8xf32>
    %cst_36 = arith.constant dense<0.000000e+00> : vector<16x1xf32>
    %74 = tpu.matmul %73, %17, %cst_36 {dimension_numbers = #tpu.dot_dimension_numbers<[1], [1], [0], [0], [0, 0, 1, 0], [], []>} : vector<16x8xf32>, vector<1x8xf32>, vector<16x1xf32> -> vector<16x1xf32>
    %75 = vector.broadcast %25 : vector<1x1xf32> to vector<16x1xf32>
    %76 = arith.mulf %74, %75 : vector<16x1xf32>
    %cst_37 = arith.constant 9.99999974E-6 : f32
    %77 = vector.broadcast %cst_37 : f32 to vector<16x1xf32>
    %78 = arith.addf %76, %77 : vector<16x1xf32>
    %79 = math.rsqrt %78 : vector<16x1xf32>
    %cst_38 = arith.constant dense<0.000000e+00> : vector<16x8xf32>
    %80 = tpu.matmul %79, %17, %cst_38 {dimension_numbers = #tpu.dot_dimension_numbers<[1], [0], [0], [1], [0, 0, 1, 1], [], []>} : vector<16x1xf32>, vector<1x8xf32>, vector<16x8xf32> -> vector<16x8xf32>
    %81 = arith.mulf %72, %80 : vector<16x8xf32>
    %c1_39 = arith.constant 1 : index
    %c0_40 = arith.constant 0 : index
    %c0_41 = arith.constant 0 : index
    %82 = vector.load %arg3[%c1_39, %c0_40, %c0_41] : memref<3x16x1xf32, #tpu.memory_space<vmem>>, vector<1x16x1xf32>
    %83 = vector.shape_cast %82 : vector<1x16x1xf32> to vector<16x1xf32>
    %84 = vector.broadcast %83 : vector<16x1xf32> to vector<16x8xf32>
    %85 = arith.mulf %81, %84 : vector<16x8xf32>
    %c1_42 = arith.constant 1 : index
    %c0_43 = arith.constant 0 : index
    %c0_44 = arith.constant 0 : index
    %86 = vector.load %arg4[%c1_42, %c0_43, %c0_44] : memref<3x16x1xf32, #tpu.memory_space<vmem>>, vector<1x16x1xf32>
    %87 = vector.shape_cast %86 : vector<1x16x1xf32> to vector<16x1xf32>
    %88 = vector.broadcast %87 : vector<16x1xf32> to vector<16x8xf32>
    %89 = arith.addf %85, %88 : vector<16x8xf32>
    %90 = vector.extract_strided_slice %89 {offsets = [0, 0], sizes = [8, 8], strides = [1, 1]} : vector<16x8xf32> to vector<8x8xf32>
    %91 = vector.extract_strided_slice %89 {offsets = [8, 0], sizes = [8, 8], strides = [1, 1]} : vector<16x8xf32> to vector<8x8xf32>
    %92 = arith.negf %91 : vector<8x8xf32>
    %93 = math.exp %92 : vector<8x8xf32>
    %cst_45 = arith.constant 1.000000e+00 : f32
    %94 = vector.broadcast %cst_45 : f32 to vector<8x8xf32>
    %95 = arith.addf %94, %93 : vector<8x8xf32>
    %96 = arith.divf %94, %95 : vector<8x8xf32>
    %97 = arith.mulf %90, %96 : vector<8x8xf32>
    %98 = arith.addf %62, %97 : vector<8x8xf32>
    %c2 = arith.constant 2 : index
    %c0_46 = arith.constant 0 : index
    %c0_47 = arith.constant 0 : index
    %99 = vector.load %arg1[%c2, %c0_46, %c0_47] : memref<3x8x8xf32, #tpu.memory_space<vmem>>, vector<1x8x8xf32>
    %100 = vector.shape_cast %99 : vector<1x8x8xf32> to vector<8x8xf32>
    %c2_48 = arith.constant 2 : index
    %c0_49 = arith.constant 0 : index
    %c0_50 = arith.constant 0 : index
    %101 = vector.load %arg2[%c2_48, %c0_49, %c0_50] : memref<3x16x8xf32, #tpu.memory_space<vmem>>, vector<1x16x8xf32>
    %102 = vector.shape_cast %101 : vector<1x16x8xf32> to vector<16x8xf32>
    %cst_51 = arith.constant dense<0.000000e+00> : vector<16x8xf32>
    %103 = tpu.matmul %102, %100, %cst_51 {dimension_numbers = #tpu.dot_dimension_numbers<[1], [1], [0], [0], [0, 0, 1, 0], [], []>} : vector<16x8xf32>, vector<8x8xf32>, vector<16x8xf32> -> vector<16x8xf32>
    %cst_52 = arith.constant dense<0.000000e+00> : vector<16x1xf32>
    %104 = tpu.matmul %103, %17, %cst_52 {dimension_numbers = #tpu.dot_dimension_numbers<[1], [1], [0], [0], [0, 0, 1, 0], [], []>} : vector<16x8xf32>, vector<1x8xf32>, vector<16x1xf32> -> vector<16x1xf32>
    %105 = vector.broadcast %25 : vector<1x1xf32> to vector<16x1xf32>
    %106 = arith.mulf %104, %105 : vector<16x1xf32>
    %cst_53 = arith.constant dense<0.000000e+00> : vector<16x8xf32>
    %107 = tpu.matmul %106, %17, %cst_53 {dimension_numbers = #tpu.dot_dimension_numbers<[1], [0], [0], [1], [0, 0, 1, 1], [], []>} : vector<16x1xf32>, vector<1x8xf32>, vector<16x8xf32> -> vector<16x8xf32>
    %108 = arith.subf %103, %107 : vector<16x8xf32>
    %109 = arith.mulf %108, %108 : vector<16x8xf32>
    %cst_54 = arith.constant dense<0.000000e+00> : vector<16x1xf32>
    %110 = tpu.matmul %109, %17, %cst_54 {dimension_numbers = #tpu.dot_dimension_numbers<[1], [1], [0], [0], [0, 0, 1, 0], [], []>} : vector<16x8xf32>, vector<1x8xf32>, vector<16x1xf32> -> vector<16x1xf32>
    %111 = vector.broadcast %25 : vector<1x1xf32> to vector<16x1xf32>
    %112 = arith.mulf %110, %111 : vector<16x1xf32>
    %cst_55 = arith.constant 9.99999974E-6 : f32
    %113 = vector.broadcast %cst_55 : f32 to vector<16x1xf32>
    %114 = arith.addf %112, %113 : vector<16x1xf32>
    %115 = math.rsqrt %114 : vector<16x1xf32>
    %cst_56 = arith.constant dense<0.000000e+00> : vector<16x8xf32>
    %116 = tpu.matmul %115, %17, %cst_56 {dimension_numbers = #tpu.dot_dimension_numbers<[1], [0], [0], [1], [0, 0, 1, 1], [], []>} : vector<16x1xf32>, vector<1x8xf32>, vector<16x8xf32> -> vector<16x8xf32>
    %117 = arith.mulf %108, %116 : vector<16x8xf32>
    %c2_57 = arith.constant 2 : index
    %c0_58 = arith.constant 0 : index
    %c0_59 = arith.constant 0 : index
    %118 = vector.load %arg3[%c2_57, %c0_58, %c0_59] : memref<3x16x1xf32, #tpu.memory_space<vmem>>, vector<1x16x1xf32>
    %119 = vector.shape_cast %118 : vector<1x16x1xf32> to vector<16x1xf32>
    %120 = vector.broadcast %119 : vector<16x1xf32> to vector<16x8xf32>
    %121 = arith.mulf %117, %120 : vector<16x8xf32>
    %c2_60 = arith.constant 2 : index
    %c0_61 = arith.constant 0 : index
    %c0_62 = arith.constant 0 : index
    %122 = vector.load %arg4[%c2_60, %c0_61, %c0_62] : memref<3x16x1xf32, #tpu.memory_space<vmem>>, vector<1x16x1xf32>
    %123 = vector.shape_cast %122 : vector<1x16x1xf32> to vector<16x1xf32>
    %124 = vector.broadcast %123 : vector<16x1xf32> to vector<16x8xf32>
    %125 = arith.addf %121, %124 : vector<16x8xf32>
    %126 = vector.extract_strided_slice %125 {offsets = [0, 0], sizes = [8, 8], strides = [1, 1]} : vector<16x8xf32> to vector<8x8xf32>
    %127 = vector.extract_strided_slice %125 {offsets = [8, 0], sizes = [8, 8], strides = [1, 1]} : vector<16x8xf32> to vector<8x8xf32>
    %128 = arith.negf %127 : vector<8x8xf32>
    %129 = math.exp %128 : vector<8x8xf32>
    %cst_63 = arith.constant 1.000000e+00 : f32
    %130 = vector.broadcast %cst_63 : f32 to vector<8x8xf32>
    %131 = arith.addf %130, %129 : vector<8x8xf32>
    %132 = arith.divf %130, %131 : vector<8x8xf32>
    %133 = arith.mulf %126, %132 : vector<8x8xf32>
    %134 = arith.addf %98, %133 : vector<8x8xf32>
    %c0_64 = arith.constant 0 : index
    %c0_65 = arith.constant 0 : index
    %135 = vector.load %arg5[%c0_64, %c0_65] : memref<8x16xf32, #tpu.memory_space<vmem>>, vector<8x16xf32>
    %cst_66 = arith.constant dense<0.000000e+00> : vector<8x16xf32>
    %136 = tpu.matmul %134, %135, %cst_66 {dimension_numbers = #tpu.dot_dimension_numbers<[0], [0], [1], [1], [0, 1, 1, 1], [], []>} : vector<8x8xf32>, vector<8x16xf32>, vector<8x16xf32> -> vector<8x16xf32>
    %c0_67 = arith.constant 0 : index
    %c0_68 = arith.constant 0 : index
    %137 = vector.load %arg6[%c0_67, %c0_68] : memref<8x16xf32, #tpu.memory_space<vmem>>, vector<8x16xf32>
    tpu.vector_store %arg6[%c0_67, %c0_68], %136 {strides = array<i32>} : memref<8x16xf32, #tpu.memory_space<vmem>>, vector<8x16xf32>,
    return
  }
  func.func @transform_0(%arg0: i32) -> (i32, i32, i32) {
    %c0_i32 = arith.constant 0 : i32
    %c0_i32_0 = arith.constant 0 : i32
    %c0_i32_1 = arith.constant 0 : i32
    return %c0_i32, %arg0, %c0_i32_0 : i32, i32, i32
  }
  func.func @transform_1(%arg0: i32) -> (i32, i32, i32) {
    %c0_i32 = arith.constant 0 : i32
    %c0_i32_0 = arith.constant 0 : i32
    %c0_i32_1 = arith.constant 0 : i32
    %c0_i32_2 = arith.constant 0 : i32
    return %c0_i32, %c0_i32_0, %c0_i32_1 : i32, i32, i32
  }
  func.func @transform_2(%arg0: i32) -> (i32, i32, i32) {
    %c0_i32 = arith.constant 0 : i32
    %c0_i32_0 = arith.constant 0 : i32
    %c0_i32_1 = arith.constant 0 : i32
    %c0_i32_2 = arith.constant 0 : i32
    return %c0_i32, %c0_i32_0, %c0_i32_1 : i32, i32, i32
  }
  func.func @transform_3(%arg0: i32) -> (i32, i32, i32) {
    %c0_i32 = arith.constant 0 : i32
    %c0_i32_0 = arith.constant 0 : i32
    %c0_i32_1 = arith.constant 0 : i32
    %c0_i32_2 = arith.constant 0 : i32
    return %c0_i32, %c0_i32_0, %c0_i32_1 : i32, i32, i32
  }
  func.func @transform_4(%arg0: i32) -> (i32, i32) {
    %c0_i32 = arith.constant 0 : i32
    %c0_i32_0 = arith.constant 0 : i32
    %c0_i32_1 = arith.constant 0 : i32
    return %c0_i32, %c0_i32_0 : i32, i32
  }
  func.func @transform_5(%arg0: i32) -> (i32, i32) {
    %c0_i32 = arith.constant 0 : i32
    %c0_i32_0 = arith.constant 0 : i32
    return %arg0, %c0_i32 : i32, i32
  }
}

</mosaic_0001>

<bundles_post_ra>
// kernel: tpu_custom_call.1
= control target key start
LH: loop header
LB: loop body
LE: loop exit
PB: predicated region body
PF: predicated region fallthrough
CT: control target
= control target key end

     0   :  { %vm60_vm0 = vcmask 64512   ;;  %v21_v1 = vlaneseq  ;;  %s1059_s0 = inlined_call_operand.vmem [shape: f32[3,8,8], index: 0, kind: input, shape index: {}]   ;;  %s1060_s1 = inlined_call_operand.vmem [shape: f32[3,16,8], index: 1, kind: input, shape index: {}]   ;;  %s1061_s2 = inlined_call_operand.vmem [shape: f32[3,16,1], index: 2, kind: input, shape index: {}]   ;;  %s1062_s3 = inlined_call_operand.vmem [shape: f32[3,16,1], index: 3, kind: input, shape index: {}]   ;;  %s1063_s4 = inlined_call_operand.vmem [shape: f32[8,16], index: 4, kind: input, shape index: {}]   ;;  %s1064_s5 = inlined_call_operand.hbm [shape: f32[8,16], index: 5, kind: output, shape index: {}]  }
   0x1   :  { %v57_v0 = vld [vmem:[%s1059_s0] sm:$0xff]  ;;  %v744_v3 = vld [vmem:[%s1059_s0 + $0x10] sm:$0xff] }
   0x2   :  { %717 = vmatpush.xpose.msk.msra.mxu0 %vm60_vm0, %v57_v0  ;;  %v58_v2 = vld [vmem:[%s1060_s1] sm:$0xff]  ;;  %v22_v4 = vand.u32 127, %v21_v1  ;;  %v24_v5 = vshrl.u32 %v21_v1, 7 }
   0x6   :  { %747 = vmatpush.xpose.msk.msrb.mxu0 %vm60_vm0, %v744_v3 }
   0x7   :  { %10 = vsyncpa [#allocation3], 0  ;;  %718 = vmatmul.msk.f32.vlgmr.msra.gmra.mxu0 %vm60_vm0, %v58_v2  ;;  %v25_v6 = vmul.u32 8, %v24_v5  ;;  %vm33_vm2 = vcmp.lt.s32.totalorder %v22_v4, 8  ;;  %v59_v8 = vld [vmem:[%s1060_s1 + $0x8] sm:$0xff]  ;;  %vm36_vm5 = vcmask 57344  }
   0x8   :  { %v821_v9 = vmov 0.0   ;;  %v745_v12 = vld [vmem:[%s1060_s1 + $0x20] sm:$0xff]  ;;  %v746_v13 = vld [vmem:[%s1060_s1 + $0x28] sm:$0xff]  ;;  %vm112_vm7 = vcmask 1040384   ;;  %vm105_vm13 = vcmask 7168   ;;  %v728_v45 = vld [vmem:[%s1060_s1 + $0x10] sm:$0xff] }
   0x9   :  { %vm26_vm1 = vcmp.ge.s32.totalorder %v22_v4, %v25_v6  ;;  %v27_v7 = vadd.s32 8, %v25_v6  ;;  %v727_v31 = vld [vmem:[%s1059_s0 + $0x8] sm:$0xff]  ;;  %v729_v46 = vld [vmem:[%s1060_s1 + $0x18] sm:$0xff]  ;;  %s708_s1 = sshll.u32 %s1064_s5, 4  ;;  %s709_s1 = int_to_ptr.hbm [resolvable:$true] %s708_s1 }
   0xb   :  { %vm28_vm3 = vcmp.lt.s32.totalorder %v22_v4, %v27_v7 }
   0xc   :  { %vm29_vm4 = vmand %vm26_vm1, %vm28_vm3 }
   0xd   :  { %vm34_vm6 = vmand %vm29_vm4, %vm33_vm2 }
   0xe   :  { %v35_v10 = vsel %vm34_vm6, 1.0, %v821_v9 }
   0xf   :  { %719 = vmatmul.msk.f32.gmra.mxu0 %vm60_vm0, %v59_v8  ;;  %v37_v11 = vsel %vm36_vm5, %v35_v10, 0.0  ;;  %v878_v14 = vperm.slane %v35_v10, 0  ;;  %720 = vmatpush.msk.msra.mxu1 %vm112_vm7, %v35_v10 }
  0x10   :  { %38 = vadd.xlane.f32.xlu0 %v37_v11  ;;  %762 = vmatpush.msk.msra.mxu3 %vm112_vm7, %v35_v10 }
  0x11   :  { %733 = vmatpush.msk.msrb.mxu1 %vm112_vm7, %v35_v10  ;;  %723 = vmatpush.msk.msra.mxu2 %vm112_vm7, %v35_v10 }
  0x12   :  { %730 = vmatpush.xpose.msk.msrb.mxu3 %vm60_vm0, %v727_v31 }
  0x13   :  { %736 = vmatpush.msk.msrb.mxu2 %vm112_vm7, %v35_v10 }
  0x17   :  { %748 = vmatmul.msk.f32.vlgmr.msrb.gmra.mxu0 %vm60_vm0, %v745_v12 }
  0x1f   :  { %749 = vmatmul.msk.f32.gmra.mxu0 %vm60_vm0, %v746_v13 }
  0x83   :  { %v39_v27 = vpop.xlane.xlu0 %38 }
  0x84   :  { %v880_v15 = vpop.f32.mrf.mxu0  ;;  %769 = vrcp.f32 %v39_v27  ;;  %vm46_vm8 = vweird.f32 %v39_v27  ;;  %v52_v33 = vand.u32 2147483648, %v39_v27  ;;  %v50_v35 = vand.u32 2147483647, %v39_v27 }
  0x85   :  { %v94_v16 = vmul.f32 %v878_v14, %v880_v15  ;;  %vm40_vm12 = vcmp.gt.f32.partialorder %v39_v27, 0.5 }
  0x86   :  { %v53_v36 = vor.u32 1.1754944e-38, %v52_v33  ;;  %vm51_vm11 = vcmp.eq.f32.partialorder %v50_v35, 8.507059e+37 }
  0x87   :  { %v96_v17 = vsel %vm60_vm0, %v94_v16, 0.0  ;;  %v740_v16 = vld [vmem:[%s1061_s2 + $0x18] sm:$0xff] }
  0x88   :  { %97 = vadd.xlane.f32.xlu1 %v96_v17 }
  0x8a   :  { %v770_v28 = vpop.eup %769 }
  0x8b   :  { %v42_v29 = vmul.f32 %v770_v28, %v39_v27  ;;  %vm47_vm9 = vweird.f32 %v770_v28 }
  0x8c   :  { %v885_v18 = vpop.f32.mrf.mxu0  ;;  %vm48_vm10 = vmor %vm46_vm8, %vm47_vm9 }
  0x8d   :  { %v95_v19 = vmul.f32 %v878_v14, %v885_v18  ;;  %v43_v30 = vsub.f32 1.0, %v42_v29 }
  0x8f   :  { %v99_v20 = vsel %vm60_vm0, %v95_v19, 0.0  ;;  %v44_v32 = vmul.f32 %v770_v28, %v43_v30 }
  0x90   :  { %100 = vadd.xlane.f32.xlu0 %v99_v20 }
  0x91   :  { %v45_v34 = vadd.f32 %v770_v28, %v44_v32 }
  0x93   :  { %v49_v37 = vsel %vm48_vm10, %v770_v28, %v45_v34 }
  0x94   :  { %v890_v21 = vpop.f32.mrf.mxu0  ;;  %v54_v38 = vsel %vm51_vm11, %v53_v36, %v49_v37  ;;  %v759_v36 = vld [vmem:[%s1062_s3 + $0x28] sm:$0xff] }
  0x95   :  { %v486_v22 = vmul.f32 %v890_v21, %v878_v14  ;;  %v56_v39 = vsel %vm40_vm12, %v54_v38, 0.0 }
  0x96   :  { %v909_v40 = vperm.slane %v56_v39, 0 }
  0x97   :  { %v488_v23 = vsel %vm60_vm0, %v486_v22, 0.0 }
  0x98   :  { %489 = vadd.xlane.f32.xlu2 %v488_v23 }
  0x9c   :  { %v895_v24 = vpop.f32.mrf.mxu0 }
  0x9d   :  { %v487_v25 = vmul.f32 %v895_v24, %v878_v14 }
  0x9f   :  { %v491_v26 = vsel %vm60_vm0, %v487_v25, 0.0  ;;  %v742_v25 = vld [vmem:[%s1062_s3 + $0x18] sm:$0xff] }
  0xa0   :  { %492 = vadd.xlane.f32.xlu0 %v491_v26 }
  0xfb   :  { %v98_v41 = vpop.xlane.xlu1 %97 }
  0xfc   :  { %v103_v42 = vmul.f32 %v909_v40, %v98_v41 }
  0xfe   :  { %721 = vmatmul.msk.f32.vlgmr.msra.gmra.mxu1 %vm105_vm13, %v103_v42 }
  0xff   :  { %753 = vmatpush.msk.msra.mxu1 %vm112_vm7, %v35_v10 }
 0x103   :  { %v101_v43 = vpop.xlane.xlu0 %100 }
 0x104   :  { %v104_v44 = vmul.f32 %v909_v40, %v101_v43 }
 0x106   :  { %722 = vmatmul.msk.f32.vlgmr.msra.gmra.mxu3 %vm105_vm13, %v104_v44 }
 0x107   :  { %750 = vmatpush.msk.msra.mxu3 %vm112_vm7, %v35_v10 }
 0x10b   :  { %v490_v47 = vpop.xlane.xlu2 %489 }
 0x10c   :  { %v494_v48 = vmul.f32 %v490_v47, %v909_v40 }
 0x10e   :  { %731 = vmatmul.msk.f32.vlgmr.msrb.gmra.mxu3 %vm60_vm0, %v728_v45  ;;  %v739_v45 = vld [vmem:[%s1061_s2 + $0x10] sm:$0xff] }
 0x113   :  { %v493_v49 = vpop.xlane.xlu0 %492 }
 0x114   :  { %v495_v50 = vmul.f32 %v493_v49, %v909_v40 }
 0x116   :  { %732 = vmatmul.msk.f32.gmra.mxu3 %vm60_vm0, %v729_v46 }
 0x11e   :  { %751 = vmatmul.msk.f32.vlgmr.msra.gmra.mxu3 %vm105_vm13, %v494_v48 }
 0x126   :  { %752 = vmatmul.msk.f32.gmra.mxu3 %vm105_vm13, %v495_v50  ;;  %v756_v50 = vld [vmem:[%s1061_s2 + $0x20] sm:$0xff] }
 0x17b   :  { %v133_v52 = vpop.f32.mrf.mxu1 }
 0x17c   :  { %v930_v53 = vsub.f32 %v880_v15, %v133_v52 }
 0x17e   :  { %v141_v56 = vmul.f32 %v930_v53, %v930_v53 }
 0x180   :  { %v143_v59 = vmul.f32 %v141_v56, %v878_v14 }
 0x182   :  { %v145_v63 = vsel %vm60_vm0, %v143_v59, 0.0 }
 0x189   :  { %v136_v51 = vpop.f32.mrf.mxu3 }
 0x18a   :  { %v940_v58 = vsub.f32 %v885_v18, %v136_v51  ;;  %v822_v18 = vmov 0  }
 0x18b   :  { %767 = vset.pattern.permute.xlu2 %v822_v18  ;;  %766 = vset.pattern.permute.xlu1 %v822_v18 }
 0x18c   :  { %v142_v62 = vmul.f32 %v940_v58, %v940_v58  ;;  %768 = vset.pattern.permute.xlu0 %v822_v18 }
 0x18e   :  { %v144_v1 = vmul.f32 %v142_v62, %v878_v14 }
 0x190   :  { %v148_v5 = vsel %vm60_vm0, %v144_v1, 0.0 }
 0x191   :  { %v932_v54 = vpop.f32.mrf.mxu3 }
 0x192   :  { %v292_v55 = vmul.f32 %v932_v54, %v878_v14 }
 0x194   :  { %v294_v57 = vsel %vm60_vm0, %v292_v55, 0.0 }
 0x195   :  { %295 = vadd.xlane.f32.xlu1 %v294_v57 }
 0x199   :  { %v943_v60 = vpop.f32.mrf.mxu3 }
 0x19a   :  { %v293_v61 = vmul.f32 %v943_v60, %v878_v14 }
 0x19c   :  { %v297_v0 = vsel %vm60_vm0, %v293_v61, 0.0 }
 0x19d   :  { %146 = vadd.xlane.f32.xlu1 %v145_v63  ;;  %298 = vadd.xlane.f32.xlu2 %v297_v0 }
 0x1a1   :  { %v519_v2 = vpop.f32.mrf.mxu3 }
 0x1a2   :  { %v953_v3 = vsub.f32 %v890_v21, %v519_v2 }
 0x1a4   :  { %v527_v4 = vmul.f32 %v953_v3, %v953_v3 }
 0x1a5   :  { %149 = vadd.xlane.f32.xlu2 %v148_v5  ;;  %v221_v5 = vld [vmem:[%s1062_s3 + $0x8] sm:$0xff] }
 0x1a6   :  { %v529_v6 = vmul.f32 %v527_v4, %v878_v14 }
 0x1a8   :  { %v531_v7 = vsel %vm60_vm0, %v529_v6, 0.0  ;;  %v206_v6 = vld [vmem:[%s1061_s2] sm:$0xff] }
 0x1a9   :  { %v522_v51 = vpop.f32.mrf.mxu3 }
 0x1aa   :  { %v989_v56 = vsub.f32 %v895_v24, %v522_v51 }
 0x1ac   :  { %v528_v61 = vmul.f32 %v989_v56, %v989_v56 }
 0x1ad   :  { %532 = vadd.xlane.f32.xlu2 %v531_v7  ;;  %v220_v7 = vld [vmem:[%s1062_s3] sm:$0xff] }
 0x1ae   :  { %v530_v24 = vmul.f32 %v528_v61, %v878_v14 }
 0x1b0   :  { %v534_v4 = vsel %vm60_vm0, %v530_v24, 0.0 }
 0x1c5   :  { %408 = vperm.xlu2 %767, %v740_v16  }
 0x1cd   :  { %423 = vperm.xlu2 %767, %v742_v25  }
 0x1d5   :  { %617 = vperm.xlu2 %767, %v759_v36  }
 0x1dd   :  { %403 = vperm.xlu2 %767, %v739_v45  }
 0x1e5   :  { %597 = vperm.xlu2 %767, %v756_v50  }
 0x208   :  { %v296_v8 = vpop.xlane.xlu1 %295 }
 0x209   :  { %v300_v9 = vmul.f32 %v296_v8, %v909_v40  ;;  %v758_v8 = vld [vmem:[%s1062_s3 + $0x20] sm:$0xff] }
 0x20b   :  { %734 = vmatmul.msk.f32.vlgmr.msrb.gmra.mxu1 %vm105_vm13, %v300_v9 }
 0x210   :  { %v147_v10 = vpop.xlane.xlu1 %146  ;;  %v299_v11 = vpop.xlane.xlu2 %298 }
 0x211   :  { %v151_v12 = vmul.f32 %v147_v10, %v909_v40  ;;  %v301_v13 = vmul.f32 %v299_v11, %v909_v40 }
 0x213   :  { %v153_v15 = vadd.f32 1e-05, %v151_v12  ;;  %735 = vmatmul.msk.f32.gmra.mxu1 %vm105_vm13, %v301_v13 }
 0x215   :  { %771 = vrsqrt.f32 %v153_v15  ;;  %vm161_vm15 = vweird.f32 %v153_v15 }
 0x218   :  { %v150_v17 = vpop.xlane.xlu2 %149 }
 0x219   :  { %v152_v19 = vmul.f32 %v150_v17, %v909_v40 }
 0x21b   :  { %v772_v20 = vpop.eup %771  ;;  %v154_v21 = vadd.f32 1e-05, %v152_v19 }
 0x21c   :  { %v156_v22 = vmul.f32 %v772_v20, %v153_v15  ;;  %vm162_vm14 = vweird.f32 %v772_v20 }
 0x21d   :  { %773 = vrsqrt.f32 %v154_v21  ;;  %vm163_vm1 = vmor %vm161_vm15, %vm162_vm14  ;;  %vm171_vm3 = vweird.f32 %v154_v21 }
 0x21e   :  { %v157_v23 = vmul.f32 %v772_v20, %v156_v22 }
 0x220   :  { %v158_v26 = vmul.f32 0.5, %v157_v23  ;;  %v533_v27 = vpop.xlane.xlu2 %532 }
 0x221   :  { %v537_v28 = vmul.f32 %v533_v27, %v909_v40 }
 0x222   :  { %v159_v29 = vsub.f32 1.5, %v158_v26 }
 0x223   :  { %v774_v30 = vpop.eup %773  ;;  %v539_v31 = vadd.f32 1e-05, %v537_v28 }
 0x224   :  { %v166_v32 = vmul.f32 %v774_v30, %v154_v21  ;;  %v160_v33 = vmul.f32 %v772_v20, %v159_v29  ;;  %vm172_vm2 = vweird.f32 %v774_v30  ;;  %v741_v21 = vld [vmem:[%s1062_s3 + $0x10] sm:$0xff] }
 0x225   :  { %775 = vrsqrt.f32 %v539_v31  ;;  %vm173_vm4 = vmor %vm171_vm3, %vm172_vm2  ;;  %vm547_vm6 = vweird.f32 %v539_v31 }
 0x226   :  { %v167_v34 = vmul.f32 %v774_v30, %v166_v32  ;;  %v164_v35 = vsel %vm163_vm1, %v772_v20, %v160_v33 }
 0x227   :  { %724 = vmatmul.msk.f32.vlgmr.msra.gmra.mxu2 %vm105_vm13, %v164_v35 }
 0x228   :  { %v168_v37 = vmul.f32 0.5, %v167_v34 }
 0x22a   :  { %v169_v38 = vsub.f32 1.5, %v168_v37 }
 0x22b   :  { %v776_v39 = vpop.eup %775 }
 0x22c   :  { %v542_v41 = vmul.f32 %v776_v39, %v539_v31  ;;  %v170_v42 = vmul.f32 %v774_v30, %v169_v38  ;;  %vm548_vm5 = vweird.f32 %v776_v39 }
 0x22d   :  { %vm549_vm7 = vmor %vm547_vm6, %vm548_vm5 }
 0x22e   :  { %v543_v43 = vmul.f32 %v776_v39, %v542_v41  ;;  %v174_v44 = vsel %vm173_vm4, %v774_v30, %v170_v42 }
 0x22f   :  { %725 = vmatmul.msk.f32.gmra.mxu2 %vm105_vm13, %v174_v44 }
 0x230   :  { %v544_v46 = vmul.f32 0.5, %v543_v43 }
 0x232   :  { %v545_v47 = vsub.f32 1.5, %v544_v46 }
 0x234   :  { %v546_v48 = vmul.f32 %v776_v39, %v545_v47 }
 0x236   :  { %v550_v49 = vsel %vm549_vm7, %v776_v39, %v546_v48  ;;  %v409_v48 = vpop.permute.xlu2 %408 }
 0x237   :  { %754 = vmatmul.msk.f32.vlgmr.msra.gmra.mxu1 %vm105_vm13, %v550_v49 }
 0x288   :  { %v325_v52 = vpop.f32.mrf.mxu1 }
 0x289   :  { %v986_v55 = vsub.f32 %v932_v54, %v325_v52  ;;  %v424_v52 = vpop.permute.xlu2 %423 }
 0x28b   :  { %v333_v57 = vmul.f32 %v986_v55, %v986_v55 }
 0x28d   :  { %v335_v59 = vmul.f32 %v333_v57, %v878_v14 }
 0x28f   :  { %v337_v62 = vsel %vm60_vm0, %v335_v59, 0.0 }
 0x290   :  { %338 = vadd.xlane.f32.xlu0 %v337_v62  ;;  %v328_v63 = vpop.f32.mrf.mxu1 }
 0x291   :  { %v998_v0 = vsub.f32 %v943_v60, %v328_v63  ;;  %v207_v60 = vld [vmem:[%s1061_s2 + $0x8] sm:$0xff] }
 0x293   :  { %v334_v54 = vmul.f32 %v998_v0, %v998_v0 }
 0x295   :  { %v336_v1 = vmul.f32 %v334_v54, %v878_v14  ;;  %v757_v14 = vld [vmem:[%s1061_s2 + $0x28] sm:$0xff] }
 0x297   :  { %v340_v2 = vsel %vm60_vm0, %v336_v1, 0.0  ;;  %v618_v1 = vpop.permute.xlu2 %617 }
 0x298   :  { %341 = vadd.xlane.f32.xlu1 %v340_v2  ;;  %535 = vadd.xlane.f32.xlu0 %v534_v4 }
 0x2aa   :  { %v198_v42 = vpop.f32.mrf.mxu2 }
 0x2ac   :  { %229 = vperm.xlu0 %768, %v221_v5  }
 0x2b1   :  { %215 = vperm.xlu1 %766, %v207_v60  }
 0x2b2   :  { %v201_v43 = vpop.f32.mrf.mxu2 }
 0x2b3   :  { %v205_v45 = vmul.f32 %v201_v43, %v940_v58 }
 0x2b4   :  { %418 = vperm.xlu0 %768, %v741_v21   ;;  %v584_v51 = vpop.f32.mrf.mxu1 }
 0x2b9   :  { %602 = vperm.xlu1 %766, %v757_v14  }
 0x2c1   :  { %210 = vperm.xlu1 %766, %v206_v6  }
 0x2c9   :  { %224 = vperm.xlu1 %766, %v220_v7  }
 0x2d1   :  { %612 = vperm.xlu1 %766, %v758_v8  }
 0x303   :  { %v339_v9 = vpop.xlane.xlu0 %338 }
 0x304   :  { %v343_v10 = vmul.f32 %v339_v9, %v909_v40 }
 0x306   :  { %v345_v11 = vadd.f32 1e-05, %v343_v10 }
 0x308   :  { %777 = vrsqrt.f32 %v345_v11  ;;  %vm353_vm9 = vweird.f32 %v345_v11 }
 0x30b   :  { %v342_v12 = vpop.xlane.xlu1 %341  ;;  %v536_v13 = vpop.xlane.xlu0 %535 }
 0x30c   :  { %v344_v15 = vmul.f32 %v342_v12, %v909_v40  ;;  %v538_v16 = vmul.f32 %v536_v13, %v909_v40 }
 0x30e   :  { %v778_v17 = vpop.eup %777  ;;  %v346_v18 = vadd.f32 1e-05, %v344_v15  ;;  %v540_v19 = vadd.f32 1e-05, %v538_v16  ;;  %v404_v15 = vpop.permute.xlu2 %403 }
 0x30f   :  { %v348_v20 = vmul.f32 %v778_v17, %v345_v11  ;;  %vm354_vm8 = vweird.f32 %v778_v17 }
 0x310   :  { %779 = vrsqrt.f32 %v346_v18  ;;  %vm355_vm10 = vmor %vm353_vm9, %vm354_vm8  ;;  %vm363_vm14 = vweird.f32 %v346_v18  ;;  %vm557_vm1 = vweird.f32 %v540_v19 }
 0x311   :  { %v349_v22 = vmul.f32 %v778_v17, %v348_v20  ;;  %781 = vrsqrt.f32 %v540_v19 }
 0x313   :  { %v350_v23 = vmul.f32 0.5, %v349_v22 }
 0x315   :  { %v351_v25 = vsub.f32 1.5, %v350_v23 }
 0x316   :  { %v780_v26 = vpop.eup %779 }
 0x317   :  { %v782_v27 = vpop.eup %781  ;;  %v358_v28 = vmul.f32 %v780_v26, %v346_v18  ;;  %v352_v40 = vmul.f32 %v778_v17, %v351_v25  ;;  %vm364_vm11 = vweird.f32 %v780_v26 }
 0x318   :  { %v552_v29 = vmul.f32 %v782_v27, %v540_v19  ;;  %vm558_vm12 = vweird.f32 %v782_v27  ;;  %vm365_vm15 = vmor %vm363_vm14, %vm364_vm11 }
 0x319   :  { %v359_v30 = vmul.f32 %v780_v26, %v358_v28  ;;  %v356_v31 = vsel %vm355_vm10, %v778_v17, %v352_v40  ;;  %vm559_vm2 = vmor %vm557_vm1, %vm558_vm12  ;;  %v590_v28 = vmul.f32 %v584_v51, %v953_v3 }
 0x31a   :  { %v553_v32 = vmul.f32 %v782_v27, %v552_v29  ;;  %737 = vmatmul.msk.f32.vlgmr.msrb.gmra.mxu2 %vm105_vm13, %v356_v31  ;;  %v598_v31 = vpop.permute.xlu2 %597 }
 0x31b   :  { %v360_v33 = vmul.f32 0.5, %v359_v30 }
 0x31c   :  { %v554_v34 = vmul.f32 0.5, %v553_v32 }
 0x31d   :  { %v361_v35 = vsub.f32 1.5, %v360_v33 }
 0x31e   :  { %v555_v36 = vsub.f32 1.5, %v554_v34  ;;  %v230_v47 = vpop.permute.xlu0 %229 }
 0x31f   :  { %v362_v37 = vmul.f32 %v780_v26, %v361_v35 }
 0x320   :  { %v556_v38 = vmul.f32 %v782_v27, %v555_v36 }
 0x321   :  { %v366_v39 = vsel %vm365_vm15, %v780_v26, %v362_v37  ;;  %vm699_vm15 = vcmask 130048  }
 0x322   :  { %738 = vmatmul.msk.f32.gmra.mxu2 %vm105_vm13, %v366_v39  ;;  %v560_v41 = vsel %vm559_vm2, %v782_v27, %v556_v38  ;;  %v204_v27 = vmul.f32 %v198_v42, %v930_v53  ;;  %v605_v38 = vmul.f32 %v598_v31, %v590_v28 }
 0x323   :  { %755 = vmatmul.msk.f32.gmra.mxu1 %vm105_vm13, %v560_v41  ;;  %v216_v44 = vpop.permute.xlu1 %215 }
 0x324   :  { %v219_v46 = vmul.f32 %v216_v44, %v205_v45 }
 0x326   :  { %v233_v49 = vadd.f32 %v230_v47, %v219_v46  ;;  %v419_v42 = vpop.permute.xlu0 %418 }
 0x328   :  { %v726_v50 = vmul.f32 -1.442695, %v233_v49 }
 0x32a   :  { %783 = vpow2.f32 %v726_v50 }
 0x32b   :  { %v603_v63 = vpop.permute.xlu1 %602 }
 0x330   :  { %v784_v59 = vpop.eup %783 }
 0x331   :  { %v237_v54 = vadd.f32 1.0, %v784_v59 }
 0x333   :  { %785 = vrcp.f32 %v237_v54  ;;  %v211_v11 = vpop.permute.xlu1 %210  ;;  %vm243_vm3 = vweird.f32 %v237_v54  ;;  %v247_v29 = vand.u32 2147483647, %v237_v54  ;;  %v249_v30 = vand.u32 2147483648, %v237_v54 }
 0x334   :  { %v218_v39 = vmul.f32 %v211_v11, %v204_v27 }
 0x335   :  { %v250_v41 = vor.u32 1.1754944e-38, %v249_v30  ;;  %vm248_vm9 = vcmp.eq.f32.partialorder %v247_v29, 8.507059e+37 }
 0x339   :  { %v786_v7 = vpop.eup %785 }
 0x33a   :  { %v239_v9 = vmul.f32 %v786_v7, %v237_v54  ;;  %vm244_vm13 = vweird.f32 %v786_v7 }
 0x33b   :  { %v225_v19 = vpop.permute.xlu1 %224  ;;  %vm1042_vm4 = vmor %vm243_vm3, %vm244_vm13 }
 0x33c   :  { %v232_v46 = vadd.f32 %v225_v19, %v218_v39 }
 0x39d   :  { %v390_v57 = vpop.f32.mrf.mxu2 }
 0x39e   :  { %v396_v23 = vmul.f32 %v390_v57, %v986_v55 }
 0x3a0   :  { %v587_v61 = vpop.f32.mrf.mxu1  ;;  %v411_v55 = vmul.f32 %v404_v15, %v396_v23 }
 0x3a1   :  { %v591_v62 = vmul.f32 %v587_v61, %v989_v56  ;;  %v643_v56 = vld [vmem:[%s1063_s4] sm:$0xff]  ;;  %s823_s4 = smov [#allocation2]  }
 0x3a2   :  { %694 = vmatpush.msra.mxu2 %v643_v56  ;;  %v426_v51 = vadd.f32 %v419_v42, %v411_v55  ;;  %s706_s7 = sshll.u32 %s823_s4, 4  ;;  %s707_s7 = int_to_ptr.vmem [resolvable:$true] %s706_s7 }
 0x3a3   :  { %v606_v24 = vmul.f32 %v603_v63, %v591_v62 }
 0x3a5   :  { %v621_v2 = vadd.f32 %v618_v1, %v606_v24  ;;  %v393_v4 = vpop.f32.mrf.mxu2 }
 0x3a6   :  { %v397_v58 = vmul.f32 %v393_v4, %v998_v0  ;;  %v240_v0 = vsub.f32 1.0, %v239_v9 }
 0x3a7   :  { %v760_v5 = vmul.f32 -1.442695, %v621_v2 }
 0x3a8   :  { %v412_v60 = vmul.f32 %v409_v48, %v397_v58  ;;  %v241_v17 = vmul.f32 %v786_v7, %v240_v0  ;;  %v613_v48 = vpop.permute.xlu1 %612 }
 0x3a9   :  { %787 = vpow2.f32 %v760_v5  ;;  %v620_v62 = vadd.f32 %v613_v48, %v605_v38 }
 0x3aa   :  { %v427_v14 = vadd.f32 %v424_v52, %v412_v60  ;;  %v242_v21 = vadd.f32 %v786_v7, %v241_v17 }
 0x3ac   :  { %v743_v6 = vmul.f32 -1.442695, %v427_v14  ;;  %v246_v32 = vsel %vm1042_vm4, %v786_v7, %v242_v21 }
 0x3ad   :  { %v251_v47 = vsel %vm248_vm9, %v250_v41, %v246_v32 }
 0x3ae   :  { %789 = vpow2.f32 %v743_v6  ;;  %v253_v61 = vmul.f32 %v251_v47, %v232_v46 }
 0x3af   :  { %v788_v8 = vpop.eup %787 }
 0x3b0   :  { %v625_v10 = vadd.f32 1.0, %v788_v8 }
 0x3b2   :  { %791 = vrcp.f32 %v625_v10  ;;  %vm631_vm6 = vweird.f32 %v625_v10  ;;  %v637_v36 = vand.u32 2147483648, %v625_v10  ;;  %v635_v37 = vand.u32 2147483647, %v625_v10 }
 0x3b4   :  { %v790_v12 = vpop.eup %789  ;;  %v638_v50 = vor.u32 1.1754944e-38, %v637_v36  ;;  %vm636_vm14 = vcmp.eq.f32.partialorder %v635_v37, 8.507059e+37 }
 0x3b5   :  { %v431_v13 = vadd.f32 1.0, %v790_v12 }
 0x3b7   :  { %793 = vrcp.f32 %v431_v13  ;;  %v443_v35 = vand.u32 2147483648, %v431_v13  ;;  %v441_v3 = vand.u32 2147483647, %v431_v13  ;;  %vm437_vm10 = vweird.f32 %v431_v13 }
 0x3b8   :  { %v792_v16 = vpop.eup %791 }
 0x3b9   :  { %v627_v18 = vmul.f32 %v792_v16, %v625_v10  ;;  %vm632_vm5 = vweird.f32 %v792_v16  ;;  %v444_v49 = vor.u32 1.1754944e-38, %v443_v35  ;;  %vm442_vm12 = vcmp.eq.f32.partialorder %v441_v3, 8.507059e+37 }
 0x3ba   :  { %vm1048_vm8 = vmor %vm631_vm6, %vm632_vm5 }
 0x3bb   :  { %v628_v20 = vsub.f32 1.0, %v627_v18 }
 0x3bd   :  { %v794_v22 = vpop.eup %793  ;;  %v629_v25 = vmul.f32 %v792_v16, %v628_v20 }
 0x3be   :  { %v433_v26 = vmul.f32 %v794_v22, %v431_v13  ;;  %vm438_vm7 = vweird.f32 %v794_v22 }
 0x3bf   :  { %v630_v34 = vadd.f32 %v792_v16, %v629_v25  ;;  %vm439_vm11 = vmor %vm437_vm10, %vm438_vm7 }
 0x3c0   :  { %v434_v33 = vsub.f32 1.0, %v433_v26 }
 0x3c1   :  { %v634_v45 = vsel %vm1048_vm8, %v792_v16, %v630_v34 }
 0x3c2   :  { %v435_v53 = vmul.f32 %v794_v22, %v434_v33  ;;  %v639_v59 = vsel %vm636_vm14, %v638_v50, %v634_v45 }
 0x3c3   :  { %v641_v24 = vmul.f32 %v639_v59, %v620_v62 }
 0x3c4   :  { %v436_v44 = vadd.f32 %v794_v22, %v435_v53 }
 0x3c6   :  { %v440_v52 = vsel %vm439_vm11, %v794_v22, %v436_v44 }
 0x3c7   :  { %v445_v57 = vsel %vm442_vm12, %v444_v49, %v440_v52 }
 0x3c8   :  { %v447_v63 = vmul.f32 %v445_v57, %v426_v51 }
 0x3ca   :  { %v448_v54 = vadd.f32 %v447_v63, %v253_v61 }
 0x3cc   :  { %v642_v1 = vadd.f32 %v641_v24, %v448_v54 }
 0x3ce   :  { %644 = vxpose.xlu0.b32.start.end [1/1] (short) (narrow) %v642_v1, 8 }
 0x472   :  { %v660_v2 = vpop.trf.xlu0 }
 0x473   :  { %761 = vmatmul.msk.f32.vlgmr.msra.gmra.mxu2 %vm60_vm0, %v660_v2 }
 0x4f6   :  { %v696_v4 = vpop.f32.mrf.mxu2 }
 0x4f7   :  { %700 = vst.msk [vmem:[#allocation2] sm:$0xff] %vm699_vm15, %v696_v4 }
 0x4f8   :  { %711 = dma.vmem_to_hbm [thread:$0]  %s707_s7, 128, %s709_s1, [#allocation3]  }
 0x4f9   :  { %819 = dma.done.wait [#allocation3], 128  }
 0x4fa   :  { %820 = vsyncadd [#allocation3], 4294967168 }
 0x4fb   :  { %716 = vsyncpa [#allocation3], 1 }

</bundles_post_ra>
